<compile_context>
chip_gen: v5e
topology: v5e:2x2
jax: 0.10.0
libtpu: 0.0.40
codegen_flags: <defaults>
</compile_context>

<pallas_src>
import jax
import jax.numpy as jnp
from jax.experimental import pallas as pl
from jax.experimental.pallas import tpu as pltpu


# ---------------------------------------------------------------------------
# Kernel
# ---------------------------------------------------------------------------
def evidential_kernel(x_ref, o_ref):
    x = x_ref[...]                                           # (tm, W)
    # Field index of each lane: flat index % 4 == lane % 4 because W % 4 == 0.
    lane = jax.lax.broadcasted_iota(jnp.int32, (1, x.shape[1]), 1)
    field = lane & 3
    is_gamma = field == 0
    is_alpha = field == 2

    # PyTorch softplus (beta=1, threshold=20): identity for x > 20.
    sp = jnp.log1p(jnp.exp(jnp.minimum(x, 20.0)))            # EUP exp/log1p
    keep = is_gamma | (x > 20.0)                             # gamma passthrough + threshold
    out = jnp.where(keep, x, sp)
    o_ref[...] = jnp.where(is_alpha, out + 1.0, out)         # alpha += 1


# ---------------------------------------------------------------------------
# Reference (also used for tiny inputs / tails)
# ---------------------------------------------------------------------------
def _reference(x):
    gamma = x[:, 0:1]
    v = jax.nn.softplus(x[:, 1:2])
    alpha = jax.nn.softplus(x[:, 2:3]) + 1.0
    beta = jax.nn.softplus(x[:, 3:4])
    return jnp.concatenate([gamma, v, alpha, beta], axis=-1)


def _choose_lane_width(total):
    for lw in (1024, 512, 256, 128):
        if total % lw == 0:
            return lw
    return None


# ---------------------------------------------------------------------------
# Pallas path (requires (4*N) % 128 == 0)
# ---------------------------------------------------------------------------
def _pallas_path(x, *, max_block_elems=1 << 20):
    N = x.shape[0]
    total = 4 * N
    dtype = x.dtype
    itemsize = dtype.itemsize
    sub = max(8, 32 // itemsize)   # sublane multiple: 8 (4B), 16 (2B), 32 (1B dtypes)

    lane_width = _choose_lane_width(total)
    assert lane_width is not None and lane_width % 128 == 0 and lane_width % 4 == 0
    rows = total // lane_width
    x2d = x.reshape(rows, lane_width)          # contiguous bitcast view, no copy

    # Block-row selection: <= max_block_elems per block, multiple of the sublane
    # quantum, and an exact divisor of `rows` when possible (no ragged last block).
    # Capped at rows//2 so the grid has >= 2 steps (both TensorCores on v7x).
    max_tm = max(sub, (max_block_elems // lane_width) // sub * sub)
    cap = min(max_tm, rows // 2) if rows >= 2 * sub else min(max_tm, rows)
    tm = None
    d = (cap // sub) * sub
    while d >= sub:
        if rows % d == 0:
            tm = d
            break
        d -= sub
    if tm is None:
        if rows <= max_tm:
            tm = rows        # single full-extent block (always layout-legal)
        else:
            tm = max_tm      # rare fallback: ragged last block (OOB writes dropped)

    grid = (pl.cdiv(rows, tm),)

    out2d = pl.pallas_call(
        evidential_kernel,
        out_shape=jax.ShapeDtypeStruct((rows, lane_width), dtype),
        grid_spec=pltpu.PrefetchScalarGridSpec(
            num_scalar_prefetch=0,
            grid=grid,
            in_specs=[pl.BlockSpec((tm, lane_width), lambda i: (i, 0))],
            out_specs=pl.BlockSpec((tm, lane_width), lambda i: (i, 0)),
        ),
        input_output_aliases={0: 0},                 # output reuses input HBM buffer
        compiler_params=pltpu.CompilerParams(
            dimension_semantics=("parallel",),       # megacore / 2-TC sharding on v7x
            vmem_limit_bytes=32 << 20,               # explicit raise above v5e's 16 MiB default
        ),
    )(x2d)
    return out2d.reshape(N, 4)


# ---------------------------------------------------------------------------
# Wrapper
# ---------------------------------------------------------------------------
def evidential_regression_final_layer(x, *, min_pallas_elements=1 << 17):
    """x: (N, 4) float array. Returns an array of the same shape/dtype."""
    assert x.ndim == 2 and x.shape[1] == 4, "expected (N, 4) input"
    N = x.shape[0]
    total = 4 * N

    # Tiny inputs: pallas_call launch + grid-step overhead dominates.
    if total < min_pallas_elements:
        return _reference(x)

    if total % 128 == 0:
        return _pallas_path(x)

    # 4*N not a multiple of 128: run the 32-row-aligned prefix through Pallas and
    # the (< 32)-row tail with plain jnp -- avoids pad + slice of the full buffer.
    prefix_n = (N // 32) * 32
    if prefix_n == 0:
        return _reference(x)
    head = _pallas_path(x[:prefix_n])
    tail = _reference(x[prefix_n:])
    return jnp.concatenate([head, tail], axis=0)


# ---------------------------------------------------------------------------
# Self-test
# ---------------------------------------------------------------------------
if __name__ == "__main__":
    key = jax.random.PRNGKey(0)
    k1, k2, k3, k4 = jax.random.split(key, 4)

    def check(x, **kw):
        ref = _reference(x)          # compute before the call (input buffer may be aliased)
        out = evidential_regression_final_layer(x, **kw)
        jax.block_until_ready(out)
        assert out.shape == x.shape and out.dtype == x.dtype
        assert jnp.allclose(out, ref, atol=1e-5, rtol=1e-5), "mismatch vs reference"

    # 1) Fast lane-dense path: lw=1024, rows=16, tm=8, grid=(2,) (both TCs on v7x).
    x1 = jax.random.normal(k1, (4096, 4), dtype=jnp.float32) * 3.0
    x1 = x1.at[0].set(jnp.array([25.0, 30.0, 100.0, 21.0], jnp.float32))  # threshold branch
    check(x1, min_pallas_elements=0)

    # 2) N % 32 == 0 but 4N only divisible by 128: lw=128, single full-extent block.
    x2 = jax.random.normal(k2, (4064, 4), dtype=jnp.float32) * 3.0
    check(x2, min_pallas_elements=0)

    # 3) N % 32 != 0: Pallas prefix + jnp tail (no pad/slice of the full buffer).
    x3 = jax.random.normal(k3, (5000, 4), dtype=jnp.float32) * 3.0
    check(x3, min_pallas_elements=0)

    # 4) Tiny N -> pure-jnp fallback path (default threshold).
    x4 = jax.random.normal(k4, (16, 4), dtype=jnp.float32) * 3.0
    check(x4)

    print("KERNEL_OK")
</pallas_src>

<mosaic_0001>
module attributes {stable_mosaic.version = 11 : i64} {
  func.func @evidential_kernel(%arg0: i32, %arg1: memref<8x1024xf32, #tpu.memory_space<vmem>>, %arg2: memref<8x1024xf32, #tpu.memory_space<vmem>>) attributes {dimension_semantics = [#tpu.dimension_semantics<parallel>], iteration_bounds = array<i64: 2>, scalar_prefetch = 0 : i64, scratch_operands = 0 : i64, tpu.core_type = #tpu.core_type<tc>, window_params = [{transform_indices = @transform_0, window_bounds = array<i64: 8, 1024>}, {transform_indices = @transform_1, window_bounds = array<i64: 8, 1024>}]} {
    %c0 = arith.constant 0 : index
    %c0_0 = arith.constant 0 : index
    %0 = vector.load %arg1[%c0, %c0_0] : memref<8x1024xf32, #tpu.memory_space<vmem>>, vector<8x1024xf32>
    %1 = tpu.iota {dimensions = array<i32: 1>} : vector<1x1024xi32>
    %c3_i32 = arith.constant 3 : i32
    %2 = vector.broadcast %c3_i32 : i32 to vector<1x1024xi32>
    %3 = arith.andi %1, %2 : vector<1x1024xi32>
    %c0_i32 = arith.constant 0 : i32
    %4 = vector.broadcast %c0_i32 : i32 to vector<1x1024xi32>
    %5 = arith.cmpi eq, %3, %4 : vector<1x1024xi32>
    %c2_i32 = arith.constant 2 : i32
    %6 = vector.broadcast %c2_i32 : i32 to vector<1x1024xi32>
    %7 = arith.cmpi eq, %3, %6 : vector<1x1024xi32>
    %cst = arith.constant 2.000000e+01 : f32
    %8 = vector.broadcast %cst : f32 to vector<8x1024xf32>
    %9 = arith.minimumf %0, %8 : vector<8x1024xf32>
    %10 = math.exp %9 : vector<8x1024xf32>
    %11 = math.log1p %10 : vector<8x1024xf32>
    %cst_1 = arith.constant 2.000000e+01 : f32
    %12 = vector.broadcast %cst_1 : f32 to vector<8x1024xf32>
    %13 = arith.cmpf ogt, %0, %12 : vector<8x1024xf32>
    %14 = vector.broadcast %5 : vector<1x1024xi1> to vector<8x1024xi1>
    %15 = arith.ori %14, %13 : vector<8x1024xi1>
    %16 = arith.select %15, %0, %11 : vector<8x1024xi1>, vector<8x1024xf32>
    %cst_2 = arith.constant 1.000000e+00 : f32
    %17 = vector.broadcast %cst_2 : f32 to vector<8x1024xf32>
    %18 = arith.addf %16, %17 : vector<8x1024xf32>
    %19 = vector.shape_cast %7 : vector<1x1024xi1> to vector<1x1024xi1>
    %20 = vector.broadcast %19 : vector<1x1024xi1> to vector<8x1024xi1>
    %21 = arith.select %20, %18, %16 : vector<8x1024xi1>, vector<8x1024xf32>
    %c0_3 = arith.constant 0 : index
    %c0_4 = arith.constant 0 : index
    %22 = vector.load %arg2[%c0_3, %c0_4] : memref<8x1024xf32, #tpu.memory_space<vmem>>, vector<8x1024xf32>
    tpu.vector_store %arg2[%c0_3, %c0_4], %21 {strides = array<i32>} : memref<8x1024xf32, #tpu.memory_space<vmem>>, vector<8x1024xf32>,
    return
  }
  func.func @transform_0(%arg0: i32) -> (i32, i32) {
    %c0_i32 = arith.constant 0 : i32
    %c0_i32_0 = arith.constant 0 : i32
    return %arg0, %c0_i32 : i32, i32
  }
  func.func @transform_1(%arg0: i32) -> (i32, i32) {
    %c0_i32 = arith.constant 0 : i32
    %c0_i32_0 = arith.constant 0 : i32
    return %arg0, %c0_i32 : i32, i32
  }
}

</mosaic_0001>

<bundles_post_ra>
// kernel: tpu_custom_call.1
= control target key start
LH: loop header
LB: loop body
LE: loop exit
PB: predicated region body
PF: predicated region fallthrough
CT: control target
= control target key end

     0   :  { %6 = vsyncpa [#allocation3], 0  ;;  %s1024_s0 = inlined_call_operand.hbm [shape: f32[16,1024], index: 0, kind: input, shape index: {}, may-alias: {0,1}]   ;;  %s1025_s1 = inlined_call_operand.hbm [shape: f32[16,1024], index: 1, kind: output, shape index: {}, may-alias: {0,1}]  }
   0x1   :  { %8 = vsyncpa [#allocation3 + $0x1], 0 }
   0x2   :  { %9 = vsyncpa [#allocation4], 0 }
   0x3   :  { %11 = vsyncpa [#allocation4 + $0x1], 0  ;;  %s641_s6 = smov 0   ;;  %s643_s7 = smov 0  }
   0x4   :  { %s645_s8 = smov 0   ;;  %s647_s9 = smov 0  }
   0x5 LB: > { %s662_s10 = sadd.s32 4294967295, %s629_s9   ;;  %s439_s11 = sadd.s32 4294967294, %s629_s9   ;;  %s629_s9 = sphi %s647_s9, %s1083_s9   ;;  %s625_s8 = sphi %s645_s8, %s1082_s8   ;;  %s621_s7 = sphi %s643_s7, %s1081_s7   ;;  %s617_s6 = sphi %s641_s6, %s1080_s6  }
   0x6   : > { %s666_s12 = sadd.s32 1, %s629_s9   ;;  %s24_s13 = sadd.s32 1, %s625_s8 }
   0x7   : > { %s21_s14 = ssub.s32 %s629_s9, %s666_s12  ;;  %p31_p0 = scmp.ne.s32.totalorder %s625_s8, %s621_s7 }
   0x8   : > { %p22_p1 = scmp.eq.s32.totalorder %s21_s14, 0  ;;  %p32_p2 = scmp.eq.s32.totalorder %s629_s9, 0 }
   0x9   : > { %p37_p3 = scmp.ne.s32.totalorder %s621_s7, %s617_s6  ;;  %p38_p4 = scmp.eq.s32.totalorder %s662_s10, 0 }
   0xa   : > { %s678_s15 = scalar_select %p22_p1, %s625_s8, %s24_s13  }
   0xb   : > { %p680_p5 = por %p32_p2, %p31_p0  ;;  %p684_p6 = por %p38_p4, %p37_p3 }
   0xc   : > { %p61_p7 = scmp.eq.s32.totalorder %s662_s10, 1  ;;  %p67_p8 = scmp.eq.s32.totalorder %s439_s11, 1 }
   0xd   : > { %p467_p10 = scmp.lt.s32.totalorder %s629_s9, 2  ;;  %s87_s20 = sand.u32 1, %s625_s8  }
   0xe   : > { %p691_p11 = por %p61_p7, %p31_p0  ;;  %p695_p12 = por %p67_p8, %p37_p3 }
   0xf   : > { %s453_s21 = sshll.u32 %s629_s9, 6  ;;  %s442_s22 = sshll.u32 %s87_s20, 6 }
  0x10   : > { %s96_s25 = scalar_lea.hbm %s1024_s0, %s453_s21  ;;  %s91_s27 = scalar_lea.vmem [#allocation2], %s442_s22 }
  0x11   : > { %s98_s26 = sshll.u32 %s96_s25, 4  ;;  %s100_s28 = sshll.u32 %s91_s27, 4  ;;  %s99_s26 = int_to_ptr.hbm [resolvable:$true] %s98_s26  ;;  %s101_s28 = int_to_ptr.vmem [resolvable:$true] %s100_s28 }
  0x12   : > { %p706_p13 = pnand %p467_p10, %p680_p5  ;;  %p445_p0 = scmp.ge.s32.totalorder %s629_s9, 1 }
  0x13   : > { %p105_p1 = scmp.lt.s32.totalorder %s629_s9, 3  ;;  %s88_s30 = scalar_lea.sflag [#allocation3], %s87_s20 }
  0x14   : > { %s533_s2 = sshra.s32 %s99_s26, 4  ;;  %p537_p3 = pneg %p706_p13  ;;  %s534_s2 = int_to_ptr.hbm [resolvable:$true] %s533_s2 }
  0x15   : > { %s535_s3 = scalar_lea.hbm %s534_s2, 64  ;;  %s540_s11 = scalar_lea.hbm %s1024_s0, 128 }
  0x16   : > { %p536_p2 = scmp.ne.s32.totalorder %s534_s2, %s535_s3  ;;  %p541_p5 = scmp.lt.s32.totalorder %s534_s2, %s1024_s0 }
  0x17   : > { %p542_p8 = scmp.lt.s32.totalorder %s540_s11, %s535_s3 }
  0x18   : > { %p538_p4 = pnand %p537_p3, %p536_p2 }
  0x19   : > { %p543_p10 = por %p542_p8, %p541_p5 }
  0x1a   : > { %p539_p7 = pneg %p538_p4 }
  0x1c   : > { %p544_p9 = pnand %p543_p10, %p539_p7 }
  0x1e   : > { %547 = shalt.err (!%p544_p9)
}
  0x1f   : > { %462 = dma.hbm_to_vmem [thread:$0]  (!%p706_p13), %s99_s26, 1024, %s101_s28, %s88_s30  }
  0x20   : > { %p106_p2 = pnand %p445_p0, %p105_p1 }
  0x21   : > { %s727_s16 = sand.u32 (!%p106_p2), 1, %s621_s7  }
  0x22   : > { %109 = sbr.rel (%p106_p2) target bundleno = 101 (0x65), region = 24  ;;  %s446_s20 = sshll.u32 (!%p106_p2), %s727_s16, 6 }
  0x23   : > { %s112_s21 = scalar_lea.sflag (!%p106_p2), [#allocation3], %s727_s16  ;;  %s733_s22 = scalar_lea.vmem (!%p106_p2), [#allocation2], %s446_s20 }
  0x27   : > { %608 = dma.done.wait (%p684_p6), %s112_s21, 1024  }
  0x28   : > { %610 = vsyncadd (%p684_p6), %s112_s21, 4294966272  ;;  %v143_v0 = vlaneseq  ;;  %v742_v2 = vld [vmem:[%s733_s22] sm:$0xff]  ;;  %v745_v3 = vld [vmem:[%s733_s22 + $0x8] sm:$0xff]  ;;  %s937_s17 = scalar_lea.vmem [#allocation5], %s446_s20  ;;  %s454_s23 = sshll.u32 %s662_s10, 6 }
  0x29   : > { %v748_v4 = vld [vmem:[%s733_s22 + $0x10] sm:$0xff]  ;;  %v176_v5 = vmin.f32 %v742_v2, 20.0  ;;  %v752_v6 = vld [vmem:[%s733_s22 + $0x18] sm:$0xff]  ;;  %v177_v7 = vmin.f32 %v745_v3, 20.0  ;;  %v760_v11 = vld [vmem:[%s733_s22 + $0x20] sm:$0xff]  ;;  %vm272_vm1 = vcmp.gt.f32.partialorder %v742_v2, 20.0  ;;  %s364_s26 = scalar_lea.hbm %s1025_s1, %s454_s23 }
  0x2a   : > { %v739_v1 = vand.u32 127, %v143_v0  ;;  %v178_v10 = vmin.f32 %v748_v4, 20.0  ;;  %v179_v15 = vmin.f32 %v752_v6, 20.0  ;;  %v768_v16 = vld [vmem:[%s733_s22 + $0x28] sm:$0xff]  ;;  %v180_v21 = vmin.f32 %v760_v11, 20.0  ;;  %v781_v23 = vld [vmem:[%s733_s22 + $0x30] sm:$0xff] }
  0x2b   : > { %v184_v8 = vmul.f32 1.442695, %v176_v5  ;;  %v186_v13 = vmul.f32 1.442695, %v177_v7  ;;  %v181_v25 = vmin.f32 %v768_v16, 20.0  ;;  %v786_v26 = vld [vmem:[%s733_s22 + $0x38] sm:$0xff] }
  0x2c   : > { %v756_v9 = vadd.s32 128, %v739_v1  ;;  %v152_v12 = vand.u32 3, %v739_v1  ;;  %v764_v14 = vadd.s32 256, %v739_v1  ;;  %v188_v17 = vmul.f32 1.442695, %v178_v10  ;;  %s366_s27 = sshll.u32 %s937_s17, 4  ;;  %s367_s27 = int_to_ptr.vmem [resolvable:$true] %s366_s27 }
  0x2d   : > { %501 = vpow2.f32 %v184_v8  ;;  %v771_v18 = vadd.s32 384, %v739_v1  ;;  %v774_v19 = vadd.s32 512, %v739_v1  ;;  %v190_v20 = vmul.f32 1.442695, %v179_v15  ;;  %s368_s28 = sshll.u32 %s364_s26, 4  ;;  %s353_s10 = scalar_lea.sflag [#allocation4], %s727_s16  ;;  %s369_s28 = int_to_ptr.hbm [resolvable:$true] %s368_s28 }
  0x2e   : > { %503 = vpow2.f32 %v186_v13  ;;  %v778_v22 = vadd.s32 640, %v739_v1  ;;  %v153_v24 = vand.u32 3, %v756_v9  ;;  %v154_v27 = vand.u32 3, %v764_v14  ;;  %s577_s29 = sshra.s32 %s369_s28, 4  ;;  %s583_s4 = scalar_lea.hbm %s1025_s1, 128  ;;  %s578_s29 = int_to_ptr.hbm [resolvable:$true] %s577_s29 }
  0x2f   : > { %505 = vpow2.f32 %v188_v17  ;;  %v192_v28 = vmul.f32 1.442695, %v180_v21  ;;  %v790_v29 = vadd.s32 768, %v739_v1  ;;  %v155_v30 = vand.u32 3, %v771_v18  ;;  %s579_s30 = scalar_lea.hbm %s578_s29, 64  ;;  %p584_p0 = scmp.lt.s32.totalorder %s578_s29, %s1025_s1 }
  0x30   : > { %507 = vpow2.f32 %v190_v20  ;;  %v156_v31 = vand.u32 3, %v774_v19  ;;  %v194_v32 = vmul.f32 1.442695, %v181_v25  ;;  %v182_v33 = vmin.f32 %v781_v23, 20.0  ;;  %p580_p6 = scmp.ne.s32.totalorder %s578_s29, %s579_s30  ;;  %p585_p1 = scmp.lt.s32.totalorder %s583_s4, %s579_s30 }
  0x31   : > { %vm795_vm0 = vcmp.eq.s32.totalorder %v152_v12, 0  ;;  %509 = vpow2.f32 %v192_v28  ;;  %v157_v35 = vand.u32 3, %v778_v22  ;;  %v183_v36 = vmin.f32 %v786_v26, 20.0 }
  0x32   : > { %vm802_vm2 = vcmp.eq.s32.totalorder %v153_v24, 0  ;;  %511 = vpow2.f32 %v194_v32  ;;  %v196_v39 = vmul.f32 1.442695, %v182_v33  ;;  %vm807_vm4 = vcmp.eq.s32.totalorder %v154_v27, 0  ;;  %vm876_vm12 = vmor %vm795_vm0, %vm272_vm1  ;;  %p581_p9 = pnand %p580_p6, %p691_p11  ;;  %p586_p3 = por %p585_p1, %p584_p0 }
  0x33   : > { %v502_v37 = vpop.eup %501  ;;  %v158_v45 = vand.u32 3, %v790_v29  ;;  %vm815_vm6 = vcmp.eq.s32.totalorder %v155_v30, 0  ;;  %v820_v54 = vmul.f32 1.442695, %v183_v36  ;;  %vm826_vm9 = vcmp.eq.s32.totalorder %v152_v12, 2 }
  0x34   : > { %v504_v40 = vpop.eup %503  ;;  %v200_v41 = vadd.f32 1.0, %v502_v37  ;;  %v203_v42 = vmul.f32 -0.5, %v502_v37  ;;  %v206_v43 = vand.u32 2147483647, %v502_v37  ;;  %513 = vpow2.f32 %v196_v39  ;;  %p582_p13 = pneg %p581_p9 }
  0x35   : > { %v506_v46 = vpop.eup %505  ;;  %v209_v47 = vadd.f32 1.0, %v504_v40  ;;  %v212_v48 = vmul.f32 -0.5, %v504_v40  ;;  %v215_v49 = vand.u32 2147483647, %v504_v40  ;;  %vm836_vm11 = vcmp.eq.s32.totalorder %v156_v31, 0 }
  0x36   : > { %v508_v50 = vpop.eup %507  ;;  %515 = vlog2.f32 %v200_v41  ;;  %v204_v51 = vadd.f32 1.0, %v203_v42  ;;  %v218_v52 = vadd.f32 1.0, %v506_v46  ;;  %vm822_vm8 = vcmp.lt.f32.partialorder %v206_v43, 0.0004427343  ;;  %p587_p4 = pnand %p586_p3, %p582_p13 }
  0x37   : > { %517 = vlog2.f32 %v209_v47  ;;  %v213_v56 = vadd.f32 1.0, %v212_v48  ;;  %v221_v57 = vmul.f32 -0.5, %v506_v46  ;;  %v510_v58 = vpop.eup %509  ;;  %vm830_vm10 = vcmp.lt.f32.partialorder %v215_v49, 0.0004427343 }
  0x38   : > { %519 = vlog2.f32 %v218_v52  ;;  %v224_v61 = vand.u32 2147483647, %v506_v46  ;;  %v227_v62 = vadd.f32 1.0, %v508_v50  ;;  %v841_v0 = vpop.eup %511  ;;  %v205_v5 = vmul.f32 %v502_v37, %v204_v51 }
  0x39   : > { %vm843_vm13 = vcmp.eq.s32.totalorder %v153_v24, 2  ;;  %v222_v8 = vadd.f32 1.0, %v221_v57  ;;  %v230_v9 = vmul.f32 -0.5, %v508_v50  ;;  %v233_v10 = vand.u32 2147483647, %v508_v50 }
  0x3a   : > { %v214_v12 = vmul.f32 %v504_v40, %v213_v56  ;;  %vm847_vm14 = vcmp.eq.s32.totalorder %v154_v27, 2  ;;  %v1049_v13 = vmov 0  ;;  %521 = vlog2.f32 %v227_v62  ;;  %v858_v20 = vpop.eup %513 }
  0x3b   : > { %v1050_v13 = vsel %vm847_vm14, 4294967295, %v1049_v13  ;;  %v236_v14 = vadd.f32 1.0, %v510_v58  ;;  %v239_v15 = vmul.f32 -0.5, %v510_v58  ;;  %vm853_vm15 = vcmp.eq.s32.totalorder %v157_v35, 0 }
  0x3c   : > { %v1051_v17 = vmov 0  ;;  %v223_v21 = vmul.f32 %v506_v46, %v222_v8  ;;  %vm860_vm7 = vcmp.lt.f32.partialorder %v224_v61, 0.0004427343  ;;  %v231_v25 = vadd.f32 1.0, %v230_v9  ;;  %v516_v28 = vpop.eup %515 }
  0x3d   : > { %v1052_v17 = vsel %vm853_vm15, 4294967295, %v1051_v17  ;;  %v242_v27 = vand.u32 2147483647, %v510_v58  ;;  %vm866_vm5 = vcmp.eq.s32.totalorder %v155_v30, 2  ;;  %v1055_v32 = vmov 0  ;;  %v518_v39 = vpop.eup %517 }
  0x3e   : > { %v1056_v32 = vsel %vm866_vm5, 4294967295, %v1055_v32  ;;  %523 = vlog2.f32 %v236_v14  ;;  %v240_v33 = vadd.f32 1.0, %v239_v15  ;;  %v245_v36 = vadd.f32 1.0, %v841_v0  ;;  %v520_v43 = vpop.eup %519 }
  0x3f   : > { %v248_v37 = vmul.f32 -0.5, %v841_v0  ;;  %v202_v40 = vmul.f32 0.6931472, %v516_v28  ;;  %v232_v18 = vmul.f32 %v508_v50, %v231_v25  ;;  %vm880_vm3 = vcmp.lt.f32.partialorder %v233_v10, 0.0004427343 }
  0x40   : > { %vm884_vm5 = vcmp.lt.f32.partialorder %v242_v27, 0.0004427343  ;;  %v211_v46 = vmul.f32 0.6931472, %v518_v39  ;;  %vm1063_vm15 = vcmp.gt.f32.partialorder %v745_v3, 20.0  ;;  %vm898_vm0 = vcmp.eq.s32.totalorder %v156_v31, 2  ;;  %v522_v31 = vpop.eup %521 }
  0x41   : > { %vm892_vm14 = vmor %vm802_vm2, %vm1063_vm15  ;;  %525 = vlog2.f32 %v245_v36  ;;  %v249_v48 = vadd.f32 1.0, %v248_v37  ;;  %v251_v49 = vand.u32 2147483647, %v841_v0  ;;  %v208_v50 = vsel %vm822_vm8, %v205_v5, %v202_v40 }
  0x42   : > { %v220_v51 = vmul.f32 0.6931472, %v520_v43  ;;  %vm1068_vm1 = vcmp.gt.f32.partialorder %v748_v4, 20.0  ;;  %v241_v38 = vmul.f32 %v510_v58, %v240_v33  ;;  %v254_v19 = vadd.f32 1.0, %v858_v20 }
  0x43   : > { %vm298_vm2 = vmor %vm807_vm4, %vm1068_vm1  ;;  %v304_v52 = vsel %vm876_vm12, %v742_v2, %v208_v50  ;;  %v217_v56 = vsel %vm830_vm10, %v214_v12, %v211_v46  ;;  %v250_v55 = vmul.f32 %v841_v0, %v249_v48  ;;  %v257_v57 = vmul.f32 -0.5, %v858_v20 }
  0x44   : > { %v312_v61 = vadd.f32 1.0, %v304_v52  ;;  %v305_v44 = vsel %vm892_vm14, %v745_v3, %v217_v56  ;;  %v226_v58 = vsel %vm860_vm7, %v223_v21, %v220_v51  ;;  %v229_v62 = vmul.f32 0.6931472, %v522_v31  ;;  %v524_v2 = vpop.eup %523 }
  0x45   : > { %vm1069_vm4 = vcmp.gt.f32.partialorder %v752_v6, 20.0  ;;  %v313_v60 = vadd.f32 1.0, %v305_v44  ;;  %v306_v0 = vsel %vm298_vm2, %v748_v4, %v226_v58  ;;  %527 = vlog2.f32 %v254_v19 }
  0x46   : > { %vm299_vm8 = vmor %vm815_vm6, %vm1069_vm4  ;;  %v258_v5 = vadd.f32 1.0, %v257_v57  ;;  %v336_v8 = vsel %vm826_vm9, %v312_v61, %v304_v52  ;;  %v314_v9 = vadd.f32 1.0, %v306_v0  ;;  %v235_v3 = vsel %vm880_vm3, %v232_v18, %v229_v62 }
  0x47   : > { %v238_v10 = vmul.f32 0.6931472, %v524_v2  ;;  %vm1070_vm7 = vcmp.gt.f32.partialorder %v760_v11, 20.0  ;;  %v526_v53 = vpop.eup %525  ;;  %344 = vst [vmem:[%s937_s17] sm:$0xff] %v336_v8  ;;  %v337_v4 = vsel %vm843_vm13, %v313_v60, %v305_v44  ;;  %v307_v59 = vsel %vm299_vm8, %v752_v6, %v235_v3 }
  0x48   : > { %vm300_vm10 = vmor %vm836_vm11, %vm1070_vm7  ;;  %vm943_vm3 = vcmp.lt.f32.partialorder %v251_v49, 0.0004427343  ;;  %v260_v63 = vand.u32 2147483647, %v858_v20  ;;  %345 = vst [vmem:[%s937_s17 + $0x8] sm:$0xff] %v337_v4  ;;  %vm1073_vm6 = vnez %v1050_v13  ;;  %v315_v15 = vadd.f32 1.0, %v307_v59 }
  0x49   : > { %v338_v14 = vsel %vm1073_vm6, %v314_v9, %v306_v0  ;;  %v244_v21 = vsel %vm884_vm5, %v241_v38, %v238_v10  ;;  %v247_v24 = vmul.f32 0.6931472, %v526_v53  ;;  %vm1074_vm9 = vcmp.gt.f32.partialorder %v768_v16, 20.0 }
  0x4a   : > { %vm1075_vm11 = vnez %v1052_v17  ;;  %346 = vst [vmem:[%s937_s17 + $0x10] sm:$0xff] %v338_v14  ;;  %v308_v6 = vsel %vm300_vm10, %v760_v11, %v244_v21  ;;  %vm961_vm13 = vcmp.eq.s32.totalorder %v158_v45, 0  ;;  %vm278_vm14 = vcmp.gt.f32.partialorder %v781_v23, 20.0 }
  0x4b   : > { %vm301_vm12 = vmor %vm1075_vm11, %vm1074_vm9  ;;  %529 = vpow2.f32 %v820_v54  ;;  %vm1078_vm5 = vnez %v1056_v32  ;;  %v316_v25 = vadd.f32 1.0, %v308_v6  ;;  %v253_v17 = vsel %vm943_vm3, %v250_v55, %v247_v24  ;;  %v528_v27 = vpop.eup %527 }
  0x4c   : > { %v339_v13 = vsel %vm1078_vm5, %v315_v15, %v307_v59  ;;  %v259_v11 = vmul.f32 %v858_v20, %v258_v5  ;;  %vm173_vm15 = vcmp.eq.s32.totalorder %v157_v35, 2  ;;  %v309_v28 = vsel %vm301_vm12, %v768_v16, %v253_v17  ;;  %vm302_vm2 = vmor %vm961_vm13, %vm278_vm14 }
  0x4d   : > { %347 = vst [vmem:[%s937_s17 + $0x18] sm:$0xff] %v339_v13  ;;  %vm261_vm1 = vcmp.lt.f32.partialorder %v260_v63, 0.0004427343  ;;  %v340_v54 = vsel %vm898_vm0, %v316_v25, %v308_v6  ;;  %v317_v32 = vadd.f32 1.0, %v309_v28  ;;  %v256_v33 = vmul.f32 0.6931472, %v528_v27 }
  0x4e   : > { %348 = vst [vmem:[%s937_s17 + $0x20] sm:$0xff] %v340_v54  ;;  %v151_v37 = vadd.s32 896, %v739_v1  ;;  %vm174_vm4 = vcmp.eq.s32.totalorder %v158_v45, 2  ;;  %vm279_vm8 = vcmp.gt.f32.partialorder %v786_v26, 20.0 }
  0x4f   : > { %v341_v36 = vsel %vm173_vm15, %v317_v32, %v309_v28  ;;  %v262_v20 = vsel %vm261_vm1, %v259_v11, %v256_v33 }
  0x50   : > { %349 = vst [vmem:[%s937_s17 + $0x28] sm:$0xff] %v341_v36  ;;  %v310_v16 = vsel %vm302_vm2, %v781_v23, %v262_v20  ;;  %v159_v18 = vand.u32 3, %v151_v37 }
  0x51   : > { %v530_v22 = vpop.eup %529  ;;  %v318_v35 = vadd.f32 1.0, %v310_v16 }
  0x52   : > { %v263_v39 = vadd.f32 1.0, %v530_v22  ;;  %v266_v40 = vmul.f32 -0.5, %v530_v22  ;;  %v269_v42 = vand.u32 2147483647, %v530_v22  ;;  %vm167_vm0 = vcmp.eq.s32.totalorder %v159_v18, 0 }
  0x53   : > { %v342_v41 = vsel %vm174_vm4, %v318_v35, %v310_v16  ;;  %vm303_vm10 = vmor %vm167_vm0, %vm279_vm8  ;;  %vm175_vm3 = vcmp.eq.s32.totalorder %v159_v18, 2 }
  0x54   : > { %531 = vlog2.f32 %v263_v39  ;;  %350 = vst [vmem:[%s937_s17 + $0x30] sm:$0xff] %v342_v41  ;;  %v267_v30 = vadd.f32 1.0, %v266_v40  ;;  %vm270_vm7 = vcmp.lt.f32.partialorder %v269_v42, 0.0004427343 }
  0x56   : > { %v268_v1 = vmul.f32 %v530_v22, %v267_v30 }
  0x5a   : > { %v532_v29 = vpop.eup %531 }
  0x5b   : > { %v265_v23 = vmul.f32 0.6931472, %v532_v29 }
  0x5d   : > { %v271_v45 = vsel %vm270_vm7, %v268_v1, %v265_v23 }
  0x5e   : > { %v311_v43 = vsel %vm303_vm10, %v786_v26, %v271_v45 }
  0x5f   : > { %v319_v46 = vadd.f32 1.0, %v311_v43 }
  0x61   : > { %v343_v34 = vsel %vm175_vm3, %v319_v46, %v311_v43 }
  0x62   : > { %351 = vst [vmem:[%s937_s17 + $0x38] sm:$0xff] %v343_v34 }
  0x63   : > { %590 = shalt.err (!%p587_p4)
}
  0x64   : > { %457 = dma.vmem_to_hbm [thread:$0]  (%p691_p11), %s367_s27, 1024, %s369_s28, %s353_s10  }
  0x65 PF: > { %s380_s13 = sand.u32 1, %s617_s6   ;;  %p1079_p7 = scmp.ge.s32.totalorder %s629_s9, 2 }
  0x66   : > { %s381_s14 = scalar_lea.sflag [#allocation4], %s380_s13 }
  0x67   : > { %p464_p5 = pnand %p1079_p7, %p695_p12 }
  0x69   : > { %p465_p8 = pneg %p464_p5 }
  0x6b   : > { %612 = dma.done.wait (%p465_p8), %s381_s14, 1024  }
  0x6c   : > { %614 = vsyncadd (%p465_p8), %s381_s14, 4294966272  ;;  %p14_p10 = scmp.ge.s32.totalorder %s666_s12, 4   ;;  %s1080_s6 = smov %s621_s7 }
  0x6d   : > { %s1081_s7 = smov %s625_s8  ;;  %s1082_s8 = smov %s678_s15 }
  0x6e   : > { %s1083_s9 = smov %s666_s12  ;;  %16 = sbr.rel (!%p14_p10) target bundleno = 5 (0x5), region = 69 }
  0x73   :  { %387 = vsyncpa [#allocation3], 1 }
  0x74   :  { %389 = vsyncpa [#allocation3 + $0x1], 1 }
  0x75   :  { %390 = vsyncpa [#allocation4], 1 }
  0x76   :  { %392 = vsyncpa [#allocation4 + $0x1], 1 }

</bundles_post_ra>
